<compile_context>
chip_gen: v5e
topology: v5e:2x2
jax: 0.10.0
libtpu: 0.0.40
codegen_flags: <defaults>
</compile_context>

<pallas_src>
import jax
import jax.numpy as jnp
from jax.experimental import pallas as pl
from jax.experimental.pallas import tpu as pltpu

HIDDEN = 64  # fixed by the module (fc1 = Linear(input_dim, 64))


def _round_up(n, m):
    return ((n + m - 1) // m) * m


def mlp_kernel(x_ref, w1_ref, b1_ref, w2_ref, b2_ref, o_ref):
    # Fully fused MLP tile: two MXU matmuls (f32 accumulate) + VPU bias add / ReLU, all in VMEM.
    x = x_ref[...]                                                       # (tile_b, input_dim) f32
    h = jnp.dot(x, w1_ref[...], preferred_element_type=jnp.float32)     # (tile_b, 64) f32
    h = jnp.maximum(h + b1_ref[...], 0.0)                               # bias + relu
    out = jnp.dot(h, w2_ref[...], preferred_element_type=jnp.float32)   # (tile_b, num_classes)
    o_ref[...] = (out + b2_ref[...]).astype(o_ref.dtype)


def _choose_tile_b(B, input_dim, num_classes):
    # Double-buffered f32 x tile + double-buffered f32 out tile dominate per-step VMEM use.
    bytes_per_row = 2 * 4 * input_dim + 2 * 4 * num_classes
    vmem_budget = 12 * 1024 * 1024          # stays inside the 16 MiB v5e scoped default
    tile_vmem = max(8, (vmem_budget // max(bytes_per_row, 1)) // 8 * 8)

    tile_b = min(_round_up(B, 8), 4096, tile_vmem)

    # For large batches keep >= 4 grid steps (>= 2 per TensorCore on v7x) so the x-read DMA
    # double-buffers against compute on each core.
    min_steps = 4
    if B > min_steps * 8:
        tile_b = min(tile_b, _round_up(pl.cdiv(B, min_steps), 8))

    return max(8, (tile_b // 8) * 8)


def surf_condition_grading(x, w1, b1, w2, b2, *, tile_b=None):
    """relu(x @ w1 + b1) @ w2 + b2, all float32.

    x:  (B, input_dim) float32
    w1: (input_dim, 64)           (transposed vs. torch fc1.weight)
    b1: (64,) or (1, 64)
    w2: (64, num_classes)         (transposed vs. torch fc2.weight)
    b2: (num_classes,) or (1, num_classes)
    """
    B, input_dim = x.shape
    hidden = w1.shape[1]
    num_classes = w2.shape[1]

    x = jnp.asarray(x, jnp.float32)
    w1 = jnp.asarray(w1, jnp.float32)
    w2 = jnp.asarray(w2, jnp.float32)
    b1 = jnp.asarray(b1, jnp.float32).reshape(1, hidden)
    b2 = jnp.asarray(b2, jnp.float32).reshape(1, num_classes)

    if tile_b is None:
        tile_b = _choose_tile_b(B, input_dim, num_classes)
    tile_b = max(8, (int(tile_b) // 8) * 8)

    grid = (pl.cdiv(B, tile_b),)

    cost = pl.CostEstimate(
        flops=2 * B * (input_dim * hidden + hidden * num_classes),
        transcendentals=0,
        bytes_accessed=4 * (B * input_dim + B * num_classes
                            + input_dim * hidden + hidden
                            + hidden * num_classes + num_classes),
    )

    out = pl.pallas_call(
        mlp_kernel,
        out_shape=jax.ShapeDtypeStruct((B, num_classes), jnp.float32),
        grid_spec=pltpu.PrefetchScalarGridSpec(
            num_scalar_prefetch=0,
            grid=grid,
            in_specs=[
                pl.BlockSpec((tile_b, input_dim), lambda i: (i, 0)),   # x tile (streamed once)
                pl.BlockSpec((input_dim, hidden), lambda i: (0, 0)),   # W1 (VMEM-resident)
                pl.BlockSpec((1, hidden), lambda i: (0, 0)),           # b1
                pl.BlockSpec((hidden, num_classes), lambda i: (0, 0)), # W2 (VMEM-resident)
                pl.BlockSpec((1, num_classes), lambda i: (0, 0)),      # b2
            ],
            out_specs=pl.BlockSpec((tile_b, num_classes), lambda i: (i, 0)),
        ),
        compiler_params=pltpu.CompilerParams(
            dimension_semantics=("parallel",),
        ),
        cost_estimate=cost,
    )(x, w1, b1, w2, b2)

    return out


def init_params(key, input_dim, num_classes, hidden=HIDDEN):
    # Mimics nn.Linear default init: U(-1/sqrt(fan_in), 1/sqrt(fan_in)), deterministic.
    k1, k2, k3, k4 = jax.random.split(key, 4)
    bound1 = 1.0 / jnp.sqrt(input_dim)
    bound2 = 1.0 / jnp.sqrt(hidden)
    w1 = jax.random.uniform(k1, (input_dim, hidden), jnp.float32, -bound1, bound1)
    b1 = jax.random.uniform(k2, (1, hidden), jnp.float32, -bound1, bound1)
    w2 = jax.random.uniform(k3, (hidden, num_classes), jnp.float32, -bound2, bound2)
    b2 = jax.random.uniform(k4, (1, num_classes), jnp.float32, -bound2, bound2)
    return w1, b1, w2, b2


def _reference(x, w1, b1, w2, b2):
    h = jnp.maximum(x @ w1 + b1, 0.0)
    return h @ w2 + b2


if __name__ == "__main__":
    key = jax.random.PRNGKey(0)
    kx, kp, kx2 = jax.random.split(key, 3)

    # Small shapes consistent with the module's forward: x is (batch, input_dim).
    B, input_dim, num_classes = 16, 32, 5
    x = jax.random.normal(kx, (B, input_dim), jnp.float32)
    w1, b1, w2, b2 = init_params(kp, input_dim, num_classes)

    out = jax.block_until_ready(surf_condition_grading(x, w1, b1, w2, b2))
    assert out.shape == (B, num_classes)
    ref = _reference(x, w1, b1, w2, b2)
    assert jnp.allclose(out, ref, atol=2e-2, rtol=2e-2)

    # Second check: batch not divisible by the tile -> ragged last block + multi-step grid.
    B2 = 1000
    x2 = jax.random.normal(kx2, (B2, input_dim), jnp.float32)
    out2 = jax.block_until_ready(surf_condition_grading(x2, w1, b1, w2, b2))
    assert out2.shape == (B2, num_classes)
    assert jnp.allclose(out2, _reference(x2, w1, b1, w2, b2), atol=2e-2, rtol=2e-2)

    # Third check: explicit tile override exercising a non-dividing tile on a larger batch.
    out3 = jax.block_until_ready(surf_condition_grading(x2, w1, b1, w2, b2, tile_b=384))
    assert jnp.allclose(out3, _reference(x2, w1, b1, w2, b2), atol=2e-2, rtol=2e-2)

    print("KERNEL_OK")
</pallas_src>

<mosaic_0001>
module attributes {stable_mosaic.version = 11 : i64} {
  func.func @mlp_kernel(%arg0: i32, %arg1: memref<16x32xf32, #tpu.memory_space<vmem>>, %arg2: memref<32x64xf32, #tpu.memory_space<vmem>>, %arg3: memref<1x64xf32, #tpu.memory_space<vmem>>, %arg4: memref<64x5xf32, #tpu.memory_space<vmem>>, %arg5: memref<1x5xf32, #tpu.memory_space<vmem>>, %arg6: memref<16x5xf32, #tpu.memory_space<vmem>>) attributes {dimension_semantics = [#tpu.dimension_semantics<parallel>], iteration_bounds = array<i64: 1>, scalar_prefetch = 0 : i64, scratch_operands = 0 : i64, tpu.core_type = #tpu.core_type<tc>, window_params = [{transform_indices = @transform_0, window_bounds = array<i64: 16, 32>}, {pipeline_mode = #tpu.pipeline_mode<synchronous>, transform_indices = @transform_1, window_bounds = array<i64: 32, 64>}, {pipeline_mode = #tpu.pipeline_mode<synchronous>, transform_indices = @transform_2, window_bounds = array<i64: 1, 64>}, {pipeline_mode = #tpu.pipeline_mode<synchronous>, transform_indices = @transform_3, window_bounds = array<i64: 64, 5>}, {pipeline_mode = #tpu.pipeline_mode<synchronous>, transform_indices = @transform_4, window_bounds = array<i64: 1, 5>}, {transform_indices = @transform_5, window_bounds = array<i64: 16, 5>}]} {
    %c0 = arith.constant 0 : index
    %c0_0 = arith.constant 0 : index
    %0 = vector.load %arg1[%c0, %c0_0] : memref<16x32xf32, #tpu.memory_space<vmem>>, vector<16x32xf32>
    %c0_1 = arith.constant 0 : index
    %c0_2 = arith.constant 0 : index
    %1 = vector.load %arg2[%c0_1, %c0_2] : memref<32x64xf32, #tpu.memory_space<vmem>>, vector<32x64xf32>
    %cst = arith.constant dense<0.000000e+00> : vector<16x64xf32>
    %2 = tpu.matmul %0, %1, %cst {dimension_numbers = #tpu.dot_dimension_numbers<[1], [0], [0], [1], [0, 0, 1, 1], [], []>} : vector<16x32xf32>, vector<32x64xf32>, vector<16x64xf32> -> vector<16x64xf32>
    %c0_3 = arith.constant 0 : index
    %c0_4 = arith.constant 0 : index
    %3 = vector.load %arg3[%c0_3, %c0_4] : memref<1x64xf32, #tpu.memory_space<vmem>>, vector<1x64xf32>
    %4 = vector.broadcast %3 : vector<1x64xf32> to vector<16x64xf32>
    %5 = arith.addf %2, %4 : vector<16x64xf32>
    %cst_5 = arith.constant 0.000000e+00 : f32
    %6 = vector.broadcast %cst_5 : f32 to vector<16x64xf32>
    %7 = arith.maximumf %5, %6 : vector<16x64xf32>
    %c0_6 = arith.constant 0 : index
    %c0_7 = arith.constant 0 : index
    %8 = vector.load %arg4[%c0_6, %c0_7] : memref<64x5xf32, #tpu.memory_space<vmem>>, vector<64x5xf32>
    %cst_8 = arith.constant dense<0.000000e+00> : vector<16x5xf32>
    %9 = tpu.matmul %7, %8, %cst_8 {dimension_numbers = #tpu.dot_dimension_numbers<[1], [0], [0], [1], [0, 0, 1, 1], [], []>} : vector<16x64xf32>, vector<64x5xf32>, vector<16x5xf32> -> vector<16x5xf32>
    %c0_9 = arith.constant 0 : index
    %c0_10 = arith.constant 0 : index
    %10 = vector.load %arg5[%c0_9, %c0_10] : memref<1x5xf32, #tpu.memory_space<vmem>>, vector<1x5xf32>
    %11 = vector.broadcast %10 : vector<1x5xf32> to vector<16x5xf32>
    %12 = arith.addf %9, %11 : vector<16x5xf32>
    %c0_11 = arith.constant 0 : index
    %c0_12 = arith.constant 0 : index
    %13 = vector.load %arg6[%c0_11, %c0_12] : memref<16x5xf32, #tpu.memory_space<vmem>>, vector<16x5xf32>
    tpu.vector_store %arg6[%c0_11, %c0_12], %12 {strides = array<i32>} : memref<16x5xf32, #tpu.memory_space<vmem>>, vector<16x5xf32>,
    return
  }
  func.func @transform_0(%arg0: i32) -> (i32, i32) {
    %c0_i32 = arith.constant 0 : i32
    %c0_i32_0 = arith.constant 0 : i32
    return %arg0, %c0_i32 : i32, i32
  }
  func.func @transform_1(%arg0: i32) -> (i32, i32) {
    %c0_i32 = arith.constant 0 : i32
    %c0_i32_0 = arith.constant 0 : i32
    %c0_i32_1 = arith.constant 0 : i32
    return %c0_i32, %c0_i32_0 : i32, i32
  }
  func.func @transform_2(%arg0: i32) -> (i32, i32) {
    %c0_i32 = arith.constant 0 : i32
    %c0_i32_0 = arith.constant 0 : i32
    %c0_i32_1 = arith.constant 0 : i32
    return %c0_i32, %c0_i32_0 : i32, i32
  }
  func.func @transform_3(%arg0: i32) -> (i32, i32) {
    %c0_i32 = arith.constant 0 : i32
    %c0_i32_0 = arith.constant 0 : i32
    %c0_i32_1 = arith.constant 0 : i32
    return %c0_i32, %c0_i32_0 : i32, i32
  }
  func.func @transform_4(%arg0: i32) -> (i32, i32) {
    %c0_i32 = arith.constant 0 : i32
    %c0_i32_0 = arith.constant 0 : i32
    %c0_i32_1 = arith.constant 0 : i32
    return %c0_i32, %c0_i32_0 : i32, i32
  }
  func.func @transform_5(%arg0: i32) -> (i32, i32) {
    %c0_i32 = arith.constant 0 : i32
    %c0_i32_0 = arith.constant 0 : i32
    return %arg0, %c0_i32 : i32, i32
  }
}

</mosaic_0001>

<bundles_post_ra>
// kernel: tpu_custom_call.1
= control target key start
LH: loop header
LB: loop body
LE: loop exit
PB: predicated region body
PF: predicated region fallthrough
CT: control target
= control target key end

     0   :  { %vm30_vm0 = vcmask 261120   ;;  %vm74_vm1 = vcmask 523264   ;;  %vm104_vm2 = vcmask 39936   ;;  %s213_s1 = inlined_call_operand.vmem [shape: f32[32,64], index: 1, kind: input, shape index: {}]   ;;  %s214_s3 = inlined_call_operand.vmem [shape: f32[64,5], index: 3, kind: input, shape index: {}]   ;;  %s215_s0 = inlined_call_operand.vmem [shape: f32[16,32], index: 0, kind: input, shape index: {}]   ;;  %s216_s2 = inlined_call_operand.vmem [shape: f32[1,64], index: 2, kind: input, shape index: {}]   ;;  %s217_s4 = inlined_call_operand.vmem [shape: f32[1,5], index: 4, kind: input, shape index: {}]   ;;  %s218_s5 = inlined_call_operand.vmem [shape: f32[16,5], index: 5, kind: output, shape index: {}]  }
   0x1   :  { %v25_v0 = vld [vmem:[%s213_s1 + $0x18] sm:$0xff]  ;;  %v24_v1 = vld [vmem:[%s213_s1 + $0x10] sm:$0xff]  ;;  %v23_v2 = vld [vmem:[%s213_s1 + $0x8] sm:$0xff] }
   0x2   :  { %115 = vmatpush.msra.mxu3 %v25_v0  ;;  %49 = vmatpush.msra.mxu0 %v25_v0  ;;  %v69_v3 = vld [vmem:[%s214_s3 + $0x38] sm:$0xff]  ;;  %v68_v4 = vld [vmem:[%s214_s3 + $0x30] sm:$0xff]  ;;  %v22_v5 = vld [vmem:[%s213_s1] sm:$0xff] }
   0x3   :  { %119 = vmatpush.msra.mxu2 %v69_v3  ;;  %89 = vmatpush.msra.mxu1 %v69_v3  ;;  %v21_v6 = vld [vmem:[%s215_s0 + $0x8] sm:$0xff]  ;;  %v20_v7 = vld [vmem:[%s215_s0] sm:$0xff]  ;;  %v65_v10 = vld [vmem:[%s214_s3 + $0x18] sm:$0xff] }
   0x4   :  { %116 = vmatpush.msra.mxu3 %v24_v1  ;;  %50 = vmatpush.msra.mxu0 %v24_v1  ;;  %v67_v8 = vld [vmem:[%s214_s3 + $0x28] sm:$0xff]  ;;  %v66_v9 = vld [vmem:[%s214_s3 + $0x20] sm:$0xff]  ;;  %v64_v11 = vld [vmem:[%s214_s3 + $0x10] sm:$0xff] }
   0x5   :  { %120 = vmatpush.msra.mxu2 %v68_v4  ;;  %90 = vmatpush.msra.mxu1 %v68_v4  ;;  %v63_v12 = vld [vmem:[%s214_s3 + $0x8] sm:$0xff]  ;;  %v62_v13 = vld [vmem:[%s214_s3] sm:$0xff] }
   0x6   :  { %117 = vmatpush.msra.mxu3 %v23_v2  ;;  %51 = vmatpush.msra.mxu0 %v23_v2  ;;  %v127_v14 = vld [vmem:[%s216_s2] ss:$0 sm:$0xff] }
   0x7   :  { %121 = vmatpush.msra.mxu2 %v67_v8  ;;  %91 = vmatpush.msra.mxu1 %v67_v8  ;;  %v128_v21 = vld [vmem:[%s217_s4] ss:$0 sm:$0xff] }
   0x8   :  { %118 = vmatpush.msra.mxu3 %v22_v5  ;;  %52 = vmatpush.msra.mxu0 %v22_v5 }
   0x9   :  { %112 = vmatmul.msk.f32.vlgmr.msra.gmra.mxu3 %vm30_vm0, %v21_v6  ;;  %111 = vmatmul.msk.f32.vlgmr.msra.gmra.mxu0 %vm30_vm0, %v20_v7 }
   0xa   :  { %122 = vmatpush.msra.mxu2 %v66_v9  ;;  %92 = vmatpush.msra.mxu1 %v66_v9 }
   0xc   :  { %123 = vmatpush.msra.mxu2 %v65_v10  ;;  %93 = vmatpush.msra.mxu1 %v65_v10 }
   0xe   :  { %124 = vmatpush.msra.mxu2 %v64_v11  ;;  %94 = vmatpush.msra.mxu1 %v64_v11 }
  0x10   :  { %125 = vmatpush.msra.mxu2 %v63_v12  ;;  %95 = vmatpush.msra.mxu1 %v63_v12 }
  0x12   :  { %126 = vmatpush.msra.mxu2 %v62_v13  ;;  %96 = vmatpush.msra.mxu1 %v62_v13 }
  0x86   :  { %v54_v15 = vpop.f32.mrf.mxu0 }
  0x87   :  { %v55_v16 = vadd.f32 %v127_v14, %v54_v15 }
  0x89   :  { %v60_v17 = vmax.f32 %v55_v16, 0.0 }
  0x8b   :  { %113 = vmatmul.msk.f32.vlgmr.msra.gmra.mxu1 %vm74_vm1, %v60_v17 }
  0x8c   :  { %v57_v18 = vpop.f32.mrf.mxu3 }
  0x8d   :  { %v58_v19 = vadd.f32 %v127_v14, %v57_v18 }
  0x8f   :  { %v61_v20 = vmax.f32 %v58_v19, 0.0 }
  0x91   :  { %114 = vmatmul.msk.f32.vlgmr.msra.gmra.mxu2 %vm74_vm1, %v61_v20 }
 0x108   :  { %v98_v22 = vpop.f32.mrf.mxu1 }
 0x109   :  { %v99_v23 = vadd.f32 %v128_v21, %v98_v22 }
 0x10b   :  { %105 = vst.msk [vmem:[%s218_s5] sm:$0xff] %vm104_vm2, %v99_v23 }
 0x114   :  { %v101_v24 = vpop.f32.mrf.mxu2 }
 0x115   :  { %v102_v25 = vadd.f32 %v128_v21, %v101_v24 }
 0x117   :  { %106 = vst.msk [vmem:[%s218_s5 + $0x8] sm:$0xff] %vm104_vm2, %v102_v25 }

</bundles_post_ra>
